<compile_context>
chip_gen: v7x
topology: tpu7x:2x2x1
jax: 0.10.0
libtpu: 0.0.40
codegen_flags: <defaults>
</compile_context>

<pallas_src>
import functools

import jax
import jax.numpy as jnp
from jax import lax
from jax.experimental import pallas as pl
from jax.experimental.pallas import tpu as pltpu

_LANE = 128
_SUBLANE = 8
_NEG_BIG = -1e30                 # logits bias for padded vocab columns
_MATMUL_DTYPE = jnp.bfloat16     # MXU operand dtype (accumulation stays f32)


def _round_up(x, m):
    return (x + m - 1) // m * m


def _tpu_generation():
    """Best-effort TPU generation (4/5/6/7) from the device kind string."""
    try:
        kind = jax.devices()[0].device_kind.lower()
    except Exception:
        return 6
    for g in (7, 6, 5, 4):
        if "v%d" % g in kind:
            return g
    return 6


def _vmem_capacity_bytes(gen):
    try:
        cap = int(getattr(pltpu.get_tpu_info(), "vmem_capacity_bytes", 0))
        if cap > 0:
            return cap
    except Exception:
        pass
    return (64 << 20) if gen >= 7 else (128 << 20)


def make_decoder_kernel(num_layers, tb, hp, vp, sos_token):
    L, TB, Hp, Vp = num_layers, tb, hp, vp

    def kernel(*refs):
        # inputs : emb[Vp,Ep], (Wx[in_p,4Hp], Wh[Hp,4Hp], b[1,4Hp]) * L,
        #          wout[Hp,Vp], bout[1,Vp], h0 block [L,TB,Hp]
        # outputs: logp block [1,TB,Vp] (streamed per step), hN block [L,TB,Hp]
        # scratch: h_s [L,TB,Hp] f32, tok_s [TB,Vp] bf16 (one-hot current token),
        #          iota_s [TB,Vp] i32 (vocab iota, built once at t==0)
        emb_ref = refs[0]
        pos = 1
        layers = []
        for _ in range(L):
            layers.append((refs[pos], refs[pos + 1], refs[pos + 2]))
            pos += 3
        wout_ref, bout_ref, h0_ref = refs[pos], refs[pos + 1], refs[pos + 2]
        logp_ref, hN_ref = refs[pos + 3], refs[pos + 4]
        h_s, tok_s, iota_s = refs[pos + 5], refs[pos + 6], refs[pos + 7]

        t = pl.program_id(1)

        @pl.when(t == 0)
        def _init():
            h_s[...] = h0_ref[...]
            iota_s[...] = lax.broadcasted_iota(jnp.int32, (TB, Vp), 1)
            tok_s[...] = (iota_s[...] == sos_token).astype(_MATMUL_DTYPE)   # SOS one-hot

        iota_v = iota_s[...]   # cached: not rebuilt per step

        # --- embedding lookup of the current token (dropout = identity, eval) ---
        # TODO(synk): for production-size vocabularies replace this one-hot MXU
        # matmul (and the one-hot feedback below) with an int32 token index kept
        # in SMEM + a per-row gather/DMA from the table; for a VMEM-resident
        # table at small V this single [TB,Vp]x[Vp,Ep] matmul is exact and cheap.
        x = jnp.dot(tok_s[...], emb_ref[...],
                    preferred_element_type=jnp.float32)              # [TB, Ep] f32

        # --- stacked GRU layers: g = x@Wx + h@Wh + b (no concat on critical path) ---
        for l in range(L):
            wx_ref, wh_ref, b_ref = layers[l]
            h_prev = h_s[l]                                          # [TB, Hp] f32
            g = (jnp.dot(x.astype(_MATMUL_DTYPE), wx_ref[...],
                         preferred_element_type=jnp.float32)
                 + jnp.dot(h_prev.astype(_MATMUL_DTYPE), wh_ref[...],
                           preferred_element_type=jnp.float32)
                 + b_ref[...])                                       # [TB, 4Hp] f32
            # lane-aligned gate blocks [r | z | gi_n | gh_n]  (PyTorch gate order r,z,n)
            r = jax.nn.sigmoid(g[:, 0:Hp])
            z = jax.nn.sigmoid(g[:, Hp:2 * Hp])
            n = jnp.tanh(g[:, 2 * Hp:3 * Hp] + r * g[:, 3 * Hp:4 * Hp])
            h_new = (1.0 - z) * n + z * h_prev
            h_s[l] = h_new
            x = h_new                        # inter-layer dropout = identity (eval)

        # --- output projection + log_softmax over (padded) vocab ---
        logits = jnp.dot(x.astype(_MATMUL_DTYPE), wout_ref[...],
                         preferred_element_type=jnp.float32) + bout_ref[...]   # [TB, Vp]
        m = jnp.max(logits, axis=-1, keepdims=True)
        s = logits - m
        logp = s - jnp.log(jnp.sum(jnp.exp(s), axis=-1, keepdims=True))
        # TODO(synk): on HBM-bandwidth-limited parts (v5e) this stream could be
        # emitted in bf16 if downstream consumers tolerate it.
        logp_ref[0] = logp                   # lane-dense [TB, Vp] store, streamed to HBM

        # --- greedy feedback: argmax over vocab, first index on ties (== torch.topk(1)) ---
        nxt = jnp.min(jnp.where(logits == m, iota_v, Vp), axis=-1, keepdims=True)   # [TB, 1]
        tok_s[...] = (iota_v == nxt).astype(_MATMUL_DTYPE)

        @pl.when(t == pl.num_programs(1) - 1)
        def _finalize():
            hN_ref[...] = h_s[...]

    return kernel


def init_decoder_params(key, num_layers, embedding_size, hidden_size, output_size):
    """Deterministic parameter init mirroring the PyTorch module's shapes."""
    params = {}
    k_emb, key = jax.random.split(key)
    params["embedding"] = jax.random.normal(k_emb, (output_size, embedding_size), jnp.float32)

    bound = 1.0 / (hidden_size ** 0.5)
    layers = []
    for l in range(num_layers):
        in_dim = embedding_size if l == 0 else hidden_size
        k1, k2, k3, k4, key = jax.random.split(key, 5)
        layers.append(dict(
            w_ih=jax.random.uniform(k1, (3 * hidden_size, in_dim), jnp.float32, -bound, bound),
            w_hh=jax.random.uniform(k2, (3 * hidden_size, hidden_size), jnp.float32, -bound, bound),
            b_ih=jax.random.uniform(k3, (3 * hidden_size,), jnp.float32, -bound, bound),
            b_hh=jax.random.uniform(k4, (3 * hidden_size,), jnp.float32, -bound, bound),
        ))
    params["gru_layers"] = layers

    k5, k6, _ = jax.random.split(key, 3)
    params["out_w"] = jax.random.uniform(k5, (output_size, hidden_size), jnp.float32, -bound, bound)
    params["out_b"] = jax.random.uniform(k6, (output_size,), jnp.float32, -bound, bound)
    return params


@functools.partial(jax.jit, static_argnames=("max_seq_length", "sos_token"))
def decoder_gru_forward(params, encoder_outputs, encoder_hidden, *, max_seq_length, sos_token):
    """Forward pass of DecoderGRU (target_tensor=None -> greedy decode).

    Returns (log_probs [B, T, V], final_hidden [L, B, H], None).
    encoder_outputs is accepted for API fidelity but unused (no attention).
    """
    del encoder_outputs
    L, B, H = encoder_hidden.shape
    V, E = params["embedding"].shape
    T = int(max_seq_length)

    Hp = _round_up(H, _LANE)
    Ep = _round_up(E, _LANE)
    Vp = _round_up(V, _LANE)

    gen = _tpu_generation()
    tb_cap = 256 if gen >= 6 else 128          # 256-row LHS amortizes weight tiles on 2x256^2 MXUs
    if B >= 16:
        # >= 2 batch blocks so the "parallel" grid axis can shard across v7x's 2 TensorCores
        nblocks = max(2, -(-B // tb_cap))
        TB = _round_up(-(-B // nblocks), _SUBLANE)
        Bp = nblocks * TB
    else:
        TB = _round_up(max(B, 1), _SUBLANE)
        Bp = TB

    f32 = jnp.float32

    # ---- padded weight preparation (once per call, outside the time loop) ----
    emb = jnp.zeros((Vp, Ep), f32).at[:V, :E].set(params["embedding"].astype(f32))
    emb = emb.astype(_MATMUL_DTYPE)

    layer_ws = []
    for l, layer in enumerate(params["gru_layers"]):
        in_dim = E if l == 0 else H
        in_p = Ep if l == 0 else Hp
        wih = layer["w_ih"].astype(f32)          # [3H, in]  gates (r|z|n)
        whh = layer["w_hh"].astype(f32)          # [3H, H]
        bih = layer["b_ih"].astype(f32)
        bhh = layer["b_hh"].astype(f32)
        Wx = jnp.zeros((in_p, 4 * Hp), f32)
        Wx = Wx.at[:in_dim, 0:H].set(wih[0:H].T)                          # r  (input)
        Wx = Wx.at[:in_dim, Hp:Hp + H].set(wih[H:2 * H].T)                # z  (input)
        Wx = Wx.at[:in_dim, 2 * Hp:2 * Hp + H].set(wih[2 * H:3 * H].T)    # gi_n
        Wh = jnp.zeros((Hp, 4 * Hp), f32)
        Wh = Wh.at[:H, 0:H].set(whh[0:H].T)                               # r  (hidden)
        Wh = Wh.at[:H, Hp:Hp + H].set(whh[H:2 * H].T)                     # z  (hidden)
        Wh = Wh.at[:H, 3 * Hp:3 * Hp + H].set(whh[2 * H:3 * H].T)         # gh_n
        bvec = jnp.zeros((1, 4 * Hp), f32)
        bvec = bvec.at[0, 0:H].set(bih[0:H] + bhh[0:H])
        bvec = bvec.at[0, Hp:Hp + H].set(bih[H:2 * H] + bhh[H:2 * H])
        bvec = bvec.at[0, 2 * Hp:2 * Hp + H].set(bih[2 * H:3 * H])
        bvec = bvec.at[0, 3 * Hp:3 * Hp + H].set(bhh[2 * H:3 * H])
        layer_ws.append((Wx.astype(_MATMUL_DTYPE), Wh.astype(_MATMUL_DTYPE), bvec))

    wout = jnp.zeros((Hp, Vp), f32).at[:H, :V].set(params["out_w"].astype(f32).T)
    wout = wout.astype(_MATMUL_DTYPE)
    bout = jnp.full((1, Vp), _NEG_BIG, f32).at[0, :V].set(params["out_b"].astype(f32))

    h0 = jnp.zeros((L, Bp, Hp), f32).at[:, :B, :H].set(encoder_hidden.astype(f32))

    inputs = [emb]
    for Wx, Wh, bvec in layer_ws:
        inputs += [Wx, Wh, bvec]
    inputs += [wout, bout, h0]

    # Constant operands: one resident VMEM copy each (untiled, single-buffered).
    # TODO(synk): if Hp/Vp grow large enough that emb/wout approach the VMEM
    # budget, keep them in HBM (memory_space=pl.ANY) and stream vocab-column tiles.
    vmem_whole = pl.BlockSpec(memory_space=pltpu.MemorySpace.VMEM)
    in_specs = [vmem_whole] * (1 + 3 * L + 2)
    in_specs += [pl.BlockSpec((L, TB, Hp), lambda b, t: (0, b, 0))]

    out_specs = (
        pl.BlockSpec((1, TB, Vp), lambda b, t: (t, b, 0)),    # per-step logp, streamed out
        pl.BlockSpec((L, TB, Hp), lambda b, t: (0, b, 0)),    # final hidden (written at last t)
    )
    out_shape = (
        jax.ShapeDtypeStruct((T, Bp, Vp), jnp.float32),
        jax.ShapeDtypeStruct((L, Bp, Hp), jnp.float32),
    )
    scratch_shapes = [
        pltpu.VMEM((L, TB, Hp), jnp.float32),      # carried hidden state
        pltpu.VMEM((TB, Vp), _MATMUL_DTYPE),       # carried one-hot of current input token
        pltpu.VMEM((TB, Vp), jnp.int32),           # cached vocab iota (built once at t==0)
    ]

    # ---- generation-aware VMEM budget derived from the actual footprint ----
    def _nbytes(a):
        return int(a.size) * jnp.dtype(a.dtype).itemsize

    weight_bytes = sum(_nbytes(a) for a in inputs[:-1])            # single resident copy
    blockio_bytes = 2 * (L * TB * Hp * 4)                          # h0 input block (2x buffered)
    blockio_bytes += 2 * (TB * Vp * 4) + 2 * (L * TB * Hp * 4)     # logp + hN output blocks
    scratch_bytes = L * TB * Hp * 4 + TB * Vp * 2 + TB * Vp * 4
    need = weight_bytes + blockio_bytes + scratch_bytes + (4 << 20)   # compiler headroom
    budget = int(_vmem_capacity_bytes(gen) * 0.85)   # ~54 MiB on v7x, ~109 MiB on v5e/v6e
    vmem_limit = int(max(16 << 20, min(need, budget)))

    # Advisory cost hint so XLA schedules neighbors around this long serial kernel.
    nblk = Bp // TB
    gate_flops = 0
    for l in range(L):
        in_p = Ep if l == 0 else Hp
        gate_flops += 2 * TB * (in_p + Hp) * 4 * Hp
    flops_step = 2 * TB * Vp * Ep + gate_flops + 2 * TB * Hp * Vp
    transc_step = TB * (3 * Hp * L + Vp)
    cost = pl.CostEstimate(
        flops=int(nblk * T * flops_step),
        transcendentals=int(nblk * T * transc_step),
        bytes_accessed=int(weight_bytes + _nbytes(h0) + T * Bp * Vp * 4 + L * Bp * Hp * 4),
    )

    kernel = make_decoder_kernel(L, TB, Hp, Vp, sos_token)

    logp_tbv, hN = pl.pallas_call(
        kernel,
        grid=(Bp // TB, T),
        in_specs=in_specs,
        out_specs=out_specs,
        out_shape=out_shape,
        scratch_shapes=scratch_shapes,
        compiler_params=pltpu.CompilerParams(
            dimension_semantics=("parallel", "arbitrary"),
            vmem_limit_bytes=vmem_limit,
        ),
        cost_estimate=cost,
    )(*inputs)

    # slice away padding, transpose time-major -> batch-first (matches batch_first=True)
    decoder_outputs = jnp.transpose(logp_tbv[:, :B, :V], (1, 0, 2))   # [B, T, V]
    decoder_hidden = hN[:, :B, :H]                                    # [L, B, H]
    return decoder_outputs, decoder_hidden, None


if __name__ == "__main__":
    # Small, deterministic configuration consistent with the module's __init__.
    batch_size = 2
    max_seq_length = 8
    num_layers = 2
    embedding_size = 16
    hidden_size = 32
    output_size = 32          # vocab size
    sos_token = 1
    # dropout_rate / teacher_forcing_ratio: eval-mode, no-target decode -> identity / unused.
    # TODO(synk): training-mode dropout and host-side teacher-forcing coin flip not modeled.

    key = jax.random.PRNGKey(0)
    k_params, k_hid, k_enc = jax.random.split(key, 3)

    params = init_decoder_params(k_params, num_layers, embedding_size, hidden_size, output_size)
    encoder_hidden = jax.random.normal(k_hid, (num_layers, batch_size, hidden_size), jnp.float32)
    encoder_outputs = jax.random.normal(k_enc, (batch_size, max_seq_length, hidden_size), jnp.float32)

    log_probs, final_hidden, _ = decoder_gru_forward(
        params, encoder_outputs, encoder_hidden,
        max_seq_length=max_seq_length, sos_token=sos_token)

    jax.block_until_ready((log_probs, final_hidden))

    assert log_probs.shape == (batch_size, max_seq_length, output_size)
    assert final_hidden.shape == (num_layers, batch_size, hidden_size)
    # each row of log_probs is a valid log-softmax distribution
    assert bool(jnp.all(jnp.isfinite(log_probs)))
    assert bool(jnp.allclose(jnp.sum(jnp.exp(log_probs), axis=-1), 1.0, atol=1e-4))

    print("KERNEL_OK")
</pallas_src>

<mosaic_0001>
module attributes {stable_mosaic.version = 11 : i64} {
  func.func @kernel(%arg0: i32, %arg1: i32, %arg2: memref<128x128xbf16, #tpu.memory_space<vmem>>, %arg3: memref<128x512xbf16, #tpu.memory_space<vmem>>, %arg4: memref<128x512xbf16, #tpu.memory_space<vmem>>, %arg5: memref<1x512xf32, #tpu.memory_space<vmem>>, %arg6: memref<128x512xbf16, #tpu.memory_space<vmem>>, %arg7: memref<128x512xbf16, #tpu.memory_space<vmem>>, %arg8: memref<1x512xf32, #tpu.memory_space<vmem>>, %arg9: memref<128x128xbf16, #tpu.memory_space<vmem>>, %arg10: memref<1x128xf32, #tpu.memory_space<vmem>>, %arg11: memref<2x8x128xf32, #tpu.memory_space<vmem>>, %arg12: memref<1x8x128xf32, #tpu.memory_space<vmem>>, %arg13: memref<2x8x128xf32, #tpu.memory_space<vmem>>, %arg14: memref<2x8x128xf32, #tpu.memory_space<vmem>>, %arg15: memref<8x128xbf16, #tpu.memory_space<vmem>>, %arg16: memref<8x128xi32, #tpu.memory_space<vmem>>) attributes {dimension_semantics = [#tpu.dimension_semantics<parallel>, #tpu.dimension_semantics<arbitrary>], iteration_bounds = array<i64: 1, 8>, scalar_prefetch = 0 : i64, scratch_operands = 3 : i64, tpu.core_type = #tpu.core_type<tc>, window_params = [{pipeline_mode = #tpu.pipeline_mode<synchronous>, transform_indices = @transform_0, window_bounds = array<i64: 128, 128>}, {pipeline_mode = #tpu.pipeline_mode<synchronous>, transform_indices = @transform_1, window_bounds = array<i64: 128, 512>}, {pipeline_mode = #tpu.pipeline_mode<synchronous>, transform_indices = @transform_2, window_bounds = array<i64: 128, 512>}, {pipeline_mode = #tpu.pipeline_mode<synchronous>, transform_indices = @transform_3, window_bounds = array<i64: 1, 512>}, {pipeline_mode = #tpu.pipeline_mode<synchronous>, transform_indices = @transform_4, window_bounds = array<i64: 128, 512>}, {pipeline_mode = #tpu.pipeline_mode<synchronous>, transform_indices = @transform_5, window_bounds = array<i64: 128, 512>}, {pipeline_mode = #tpu.pipeline_mode<synchronous>, transform_indices = @transform_6, window_bounds = array<i64: 1, 512>}, {pipeline_mode = #tpu.pipeline_mode<synchronous>, transform_indices = @transform_7, window_bounds = array<i64: 128, 128>}, {pipeline_mode = #tpu.pipeline_mode<synchronous>, transform_indices = @transform_8, window_bounds = array<i64: 1, 128>}, {transform_indices = @transform_9, window_bounds = array<i64: 2, 8, 128>}, {transform_indices = @transform_10, window_bounds = array<i64: 1, 8, 128>}, {transform_indices = @transform_11, window_bounds = array<i64: 2, 8, 128>}]} {
    %c0_i32 = arith.constant 0 : i32
    %0 = arith.cmpi eq, %arg1, %c0_i32 : i32
    %1 = arith.extui %0 : i1 to i32
    %c0_i32_0 = arith.constant 0 : i32
    %2 = arith.cmpi ne, %1, %c0_i32_0 : i32
    scf.if %2 {
      %c0_53 = arith.constant 0 : index
      %c0_54 = arith.constant 0 : index
      %c0_55 = arith.constant 0 : index
      %115 = vector.load %arg11[%c0_53, %c0_54, %c0_55] : memref<2x8x128xf32, #tpu.memory_space<vmem>>, vector<2x8x128xf32>
      %c0_56 = arith.constant 0 : index
      %c0_57 = arith.constant 0 : index
      %c0_58 = arith.constant 0 : index
      %116 = vector.load %arg14[%c0_56, %c0_57, %c0_58] : memref<2x8x128xf32, #tpu.memory_space<vmem>>, vector<2x8x128xf32>
      tpu.vector_store %arg14[%c0_56, %c0_57, %c0_58], %115 {strides = array<i32>} : memref<2x8x128xf32, #tpu.memory_space<vmem>>, vector<2x8x128xf32>,
      %117 = tpu.iota {dimensions = array<i32: 1>} : vector<8x128xi32>
      %c0_59 = arith.constant 0 : index
      %c0_60 = arith.constant 0 : index
      %118 = vector.load %arg16[%c0_59, %c0_60] : memref<8x128xi32, #tpu.memory_space<vmem>>, vector<8x128xi32>
      tpu.vector_store %arg16[%c0_59, %c0_60], %117 {strides = array<i32>} : memref<8x128xi32, #tpu.memory_space<vmem>>, vector<8x128xi32>,
      %c0_61 = arith.constant 0 : index
      %c0_62 = arith.constant 0 : index
      %119 = vector.load %arg16[%c0_61, %c0_62] : memref<8x128xi32, #tpu.memory_space<vmem>>, vector<8x128xi32>
      %c1_i32 = arith.constant 1 : i32
      %120 = vector.broadcast %c1_i32 : i32 to vector<8x128xi32>
      %121 = arith.cmpi eq, %119, %120 : vector<8x128xi32>
      %122 = arith.extui %121 : vector<8x128xi1> to vector<8x128xi32>
      %123 = arith.sitofp %122 : vector<8x128xi32> to vector<8x128xf32>
      %124 = arith.truncf %123 : vector<8x128xf32> to vector<8x128xbf16>
      %c0_63 = arith.constant 0 : index
      %c0_64 = arith.constant 0 : index
      %125 = vector.load %arg15[%c0_63, %c0_64] : memref<8x128xbf16, #tpu.memory_space<vmem>>, vector<8x128xbf16>
      tpu.vector_store %arg15[%c0_63, %c0_64], %124 {strides = array<i32>} : memref<8x128xbf16, #tpu.memory_space<vmem>>, vector<8x128xbf16>,
    } else {
    }
    %c0 = arith.constant 0 : index
    %c0_1 = arith.constant 0 : index
    %3 = vector.load %arg16[%c0, %c0_1] : memref<8x128xi32, #tpu.memory_space<vmem>>, vector<8x128xi32>
    %c0_2 = arith.constant 0 : index
    %c0_3 = arith.constant 0 : index
    %4 = vector.load %arg15[%c0_2, %c0_3] : memref<8x128xbf16, #tpu.memory_space<vmem>>, vector<8x128xbf16>
    %c0_4 = arith.constant 0 : index
    %c0_5 = arith.constant 0 : index
    %5 = vector.load %arg2[%c0_4, %c0_5] : memref<128x128xbf16, #tpu.memory_space<vmem>>, vector<128x128xbf16>
    %cst = arith.constant dense<0.000000e+00> : vector<8x128xf32>
    %6 = tpu.matmul %4, %5, %cst {dimension_numbers = #tpu.dot_dimension_numbers<[1], [0], [0], [1], [0, 0, 1, 1], [], []>} : vector<8x128xbf16>, vector<128x128xbf16>, vector<8x128xf32> -> vector<8x128xf32>
    %c0_6 = arith.constant 0 : index
    %c0_7 = arith.constant 0 : index
    %c0_8 = arith.constant 0 : index
    %7 = vector.load %arg14[%c0_6, %c0_7, %c0_8] : memref<2x8x128xf32, #tpu.memory_space<vmem>>, vector<1x8x128xf32>
    %8 = vector.shape_cast %7 : vector<1x8x128xf32> to vector<8x128xf32>
    %9 = arith.truncf %6 : vector<8x128xf32> to vector<8x128xbf16>
    %c0_9 = arith.constant 0 : index
    %c0_10 = arith.constant 0 : index
    %10 = vector.load %arg3[%c0_9, %c0_10] : memref<128x512xbf16, #tpu.memory_space<vmem>>, vector<128x512xbf16>
    %cst_11 = arith.constant dense<0.000000e+00> : vector<8x512xf32>
    %11 = tpu.matmul %9, %10, %cst_11 {dimension_numbers = #tpu.dot_dimension_numbers<[1], [0], [0], [1], [0, 0, 1, 1], [], []>} : vector<8x128xbf16>, vector<128x512xbf16>, vector<8x512xf32> -> vector<8x512xf32>
    %12 = arith.truncf %8 : vector<8x128xf32> to vector<8x128xbf16>
    %c0_12 = arith.constant 0 : index
    %c0_13 = arith.constant 0 : index
    %13 = vector.load %arg4[%c0_12, %c0_13] : memref<128x512xbf16, #tpu.memory_space<vmem>>, vector<128x512xbf16>
    %cst_14 = arith.constant dense<0.000000e+00> : vector<8x512xf32>
    %14 = tpu.matmul %12, %13, %cst_14 {dimension_numbers = #tpu.dot_dimension_numbers<[1], [0], [0], [1], [0, 0, 1, 1], [], []>} : vector<8x128xbf16>, vector<128x512xbf16>, vector<8x512xf32> -> vector<8x512xf32>
    %15 = arith.addf %11, %14 : vector<8x512xf32>
    %c0_15 = arith.constant 0 : index
    %c0_16 = arith.constant 0 : index
    %16 = vector.load %arg5[%c0_15, %c0_16] : memref<1x512xf32, #tpu.memory_space<vmem>>, vector<1x512xf32>
    %17 = vector.broadcast %16 : vector<1x512xf32> to vector<8x512xf32>
    %18 = arith.addf %15, %17 : vector<8x512xf32>
    %19 = vector.extract_strided_slice %18 {offsets = [0, 0], sizes = [8, 128], strides = [1, 1]} : vector<8x512xf32> to vector<8x128xf32>
    %20 = arith.negf %19 : vector<8x128xf32>
    %21 = math.exp %20 : vector<8x128xf32>
    %cst_17 = arith.constant 1.000000e+00 : f32
    %22 = vector.broadcast %cst_17 : f32 to vector<8x128xf32>
    %23 = arith.addf %22, %21 : vector<8x128xf32>
    %24 = arith.divf %22, %23 : vector<8x128xf32>
    %25 = vector.extract_strided_slice %18 {offsets = [0, 128], sizes = [8, 128], strides = [1, 1]} : vector<8x512xf32> to vector<8x128xf32>
    %26 = arith.negf %25 : vector<8x128xf32>
    %27 = math.exp %26 : vector<8x128xf32>
    %cst_18 = arith.constant 1.000000e+00 : f32
    %28 = vector.broadcast %cst_18 : f32 to vector<8x128xf32>
    %29 = arith.addf %28, %27 : vector<8x128xf32>
    %30 = arith.divf %28, %29 : vector<8x128xf32>
    %31 = vector.extract_strided_slice %18 {offsets = [0, 256], sizes = [8, 128], strides = [1, 1]} : vector<8x512xf32> to vector<8x128xf32>
    %32 = vector.extract_strided_slice %18 {offsets = [0, 384], sizes = [8, 128], strides = [1, 1]} : vector<8x512xf32> to vector<8x128xf32>
    %33 = arith.mulf %24, %32 : vector<8x128xf32>
    %34 = arith.addf %31, %33 : vector<8x128xf32>
    %35 = math.tanh %34 : vector<8x128xf32>
    %cst_19 = arith.constant 1.000000e+00 : f32
    %36 = vector.broadcast %cst_19 : f32 to vector<8x128xf32>
    %37 = arith.subf %36, %30 : vector<8x128xf32>
    %38 = arith.mulf %37, %35 : vector<8x128xf32>
    %39 = arith.mulf %30, %8 : vector<8x128xf32>
    %40 = arith.addf %38, %39 : vector<8x128xf32>
    %c0_20 = arith.constant 0 : index
    %c0_21 = arith.constant 0 : index
    %c0_22 = arith.constant 0 : index
    %41 = vector.load %arg14[%c0_20, %c0_21, %c0_22] : memref<2x8x128xf32, #tpu.memory_space<vmem>>, vector<1x8x128xf32>
    %42 = vector.shape_cast %41 : vector<1x8x128xf32> to vector<8x128xf32>
    %43 = vector.shape_cast %40 : vector<8x128xf32> to vector<1x8x128xf32>
    tpu.vector_store %arg14[%c0_20, %c0_21, %c0_22], %43 {strides = array<i32>} : memref<2x8x128xf32, #tpu.memory_space<vmem>>, vector<1x8x128xf32>,
    %c1 = arith.constant 1 : index
    %c0_23 = arith.constant 0 : index
    %c0_24 = arith.constant 0 : index
    %44 = vector.load %arg14[%c1, %c0_23, %c0_24] : memref<2x8x128xf32, #tpu.memory_space<vmem>>, vector<1x8x128xf32>
    %45 = vector.shape_cast %44 : vector<1x8x128xf32> to vector<8x128xf32>
    %46 = arith.truncf %40 : vector<8x128xf32> to vector<8x128xbf16>
    %c0_25 = arith.constant 0 : index
    %c0_26 = arith.constant 0 : index
    %47 = vector.load %arg6[%c0_25, %c0_26] : memref<128x512xbf16, #tpu.memory_space<vmem>>, vector<128x512xbf16>
    %cst_27 = arith.constant dense<0.000000e+00> : vector<8x512xf32>
    %48 = tpu.matmul %46, %47, %cst_27 {dimension_numbers = #tpu.dot_dimension_numbers<[1], [0], [0], [1], [0, 0, 1, 1], [], []>} : vector<8x128xbf16>, vector<128x512xbf16>, vector<8x512xf32> -> vector<8x512xf32>
    %49 = arith.truncf %45 : vector<8x128xf32> to vector<8x128xbf16>
    %c0_28 = arith.constant 0 : index
    %c0_29 = arith.constant 0 : index
    %50 = vector.load %arg7[%c0_28, %c0_29] : memref<128x512xbf16, #tpu.memory_space<vmem>>, vector<128x512xbf16>
    %cst_30 = arith.constant dense<0.000000e+00> : vector<8x512xf32>
    %51 = tpu.matmul %49, %50, %cst_30 {dimension_numbers = #tpu.dot_dimension_numbers<[1], [0], [0], [1], [0, 0, 1, 1], [], []>} : vector<8x128xbf16>, vector<128x512xbf16>, vector<8x512xf32> -> vector<8x512xf32>
    %52 = arith.addf %48, %51 : vector<8x512xf32>
    %c0_31 = arith.constant 0 : index
    %c0_32 = arith.constant 0 : index
    %53 = vector.load %arg8[%c0_31, %c0_32] : memref<1x512xf32, #tpu.memory_space<vmem>>, vector<1x512xf32>
    %54 = vector.broadcast %53 : vector<1x512xf32> to vector<8x512xf32>
    %55 = arith.addf %52, %54 : vector<8x512xf32>
    %56 = vector.extract_strided_slice %55 {offsets = [0, 0], sizes = [8, 128], strides = [1, 1]} : vector<8x512xf32> to vector<8x128xf32>
    %57 = arith.negf %56 : vector<8x128xf32>
    %58 = math.exp %57 : vector<8x128xf32>
    %cst_33 = arith.constant 1.000000e+00 : f32
    %59 = vector.broadcast %cst_33 : f32 to vector<8x128xf32>
    %60 = arith.addf %59, %58 : vector<8x128xf32>
    %61 = arith.divf %59, %60 : vector<8x128xf32>
    %62 = vector.extract_strided_slice %55 {offsets = [0, 128], sizes = [8, 128], strides = [1, 1]} : vector<8x512xf32> to vector<8x128xf32>
    %63 = arith.negf %62 : vector<8x128xf32>
    %64 = math.exp %63 : vector<8x128xf32>
    %cst_34 = arith.constant 1.000000e+00 : f32
    %65 = vector.broadcast %cst_34 : f32 to vector<8x128xf32>
    %66 = arith.addf %65, %64 : vector<8x128xf32>
    %67 = arith.divf %65, %66 : vector<8x128xf32>
    %68 = vector.extract_strided_slice %55 {offsets = [0, 256], sizes = [8, 128], strides = [1, 1]} : vector<8x512xf32> to vector<8x128xf32>
    %69 = vector.extract_strided_slice %55 {offsets = [0, 384], sizes = [8, 128], strides = [1, 1]} : vector<8x512xf32> to vector<8x128xf32>
    %70 = arith.mulf %61, %69 : vector<8x128xf32>
    %71 = arith.addf %68, %70 : vector<8x128xf32>
    %72 = math.tanh %71 : vector<8x128xf32>
    %cst_35 = arith.constant 1.000000e+00 : f32
    %73 = vector.broadcast %cst_35 : f32 to vector<8x128xf32>
    %74 = arith.subf %73, %67 : vector<8x128xf32>
    %75 = arith.mulf %74, %72 : vector<8x128xf32>
    %76 = arith.mulf %67, %45 : vector<8x128xf32>
    %77 = arith.addf %75, %76 : vector<8x128xf32>
    %c1_36 = arith.constant 1 : index
    %c0_37 = arith.constant 0 : index
    %c0_38 = arith.constant 0 : index
    %78 = vector.load %arg14[%c1_36, %c0_37, %c0_38] : memref<2x8x128xf32, #tpu.memory_space<vmem>>, vector<1x8x128xf32>
    %79 = vector.shape_cast %78 : vector<1x8x128xf32> to vector<8x128xf32>
    %80 = vector.shape_cast %77 : vector<8x128xf32> to vector<1x8x128xf32>
    tpu.vector_store %arg14[%c1_36, %c0_37, %c0_38], %80 {strides = array<i32>} : memref<2x8x128xf32, #tpu.memory_space<vmem>>, vector<1x8x128xf32>,
    %81 = arith.truncf %77 : vector<8x128xf32> to vector<8x128xbf16>
    %c0_39 = arith.constant 0 : index
    %c0_40 = arith.constant 0 : index
    %82 = vector.load %arg9[%c0_39, %c0_40] : memref<128x128xbf16, #tpu.memory_space<vmem>>, vector<128x128xbf16>
    %cst_41 = arith.constant dense<0.000000e+00> : vector<8x128xf32>
    %83 = tpu.matmul %81, %82, %cst_41 {dimension_numbers = #tpu.dot_dimension_numbers<[1], [0], [0], [1], [0, 0, 1, 1], [], []>} : vector<8x128xbf16>, vector<128x128xbf16>, vector<8x128xf32> -> vector<8x128xf32>
    %c0_42 = arith.constant 0 : index
    %c0_43 = arith.constant 0 : index
    %84 = vector.load %arg10[%c0_42, %c0_43] : memref<1x128xf32, #tpu.memory_space<vmem>>, vector<1x128xf32>
    %85 = vector.broadcast %84 : vector<1x128xf32> to vector<8x128xf32>
    %86 = arith.addf %83, %85 : vector<8x128xf32>
    %cst_44 = arith.constant dense<0xFF800000> : vector<8xf32>
    %87 = vector.multi_reduction <maximumf>, %86, %cst_44 [1] : vector<8x128xf32> to vector<8xf32>
    %88 = vector.shape_cast %87 : vector<8xf32> to vector<8x1xf32>
    %89 = vector.broadcast %88 : vector<8x1xf32> to vector<8x128xf32>
    %90 = arith.subf %86, %89 : vector<8x128xf32>
    %91 = math.exp %90 : vector<8x128xf32>
    %cst_45 = arith.constant dense<0.000000e+00> : vector<8xf32>
    %92 = vector.multi_reduction <add>, %91, %cst_45 [1] : vector<8x128xf32> to vector<8xf32>
    %93 = vector.shape_cast %92 : vector<8xf32> to vector<8x1xf32>
    %94 = math.log %93 : vector<8x1xf32>
    %95 = vector.broadcast %94 : vector<8x1xf32> to vector<8x128xf32>
    %96 = arith.subf %90, %95 : vector<8x128xf32>
    %c0_46 = arith.constant 0 : index
    %c0_47 = arith.constant 0 : index
    %c0_48 = arith.constant 0 : index
    %97 = vector.load %arg12[%c0_46, %c0_47, %c0_48] : memref<1x8x128xf32, #tpu.memory_space<vmem>>, vector<1x8x128xf32>
    %98 = vector.shape_cast %97 : vector<1x8x128xf32> to vector<8x128xf32>
    %99 = vector.shape_cast %96 : vector<8x128xf32> to vector<1x8x128xf32>
    tpu.vector_store %arg12[%c0_46, %c0_47, %c0_48], %99 {strides = array<i32>} : memref<1x8x128xf32, #tpu.memory_space<vmem>>, vector<1x8x128xf32>,
    %100 = vector.broadcast %88 : vector<8x1xf32> to vector<8x128xf32>
    %101 = arith.cmpf oeq, %86, %100 : vector<8x128xf32>
    %c128_i32 = arith.constant 128 : i32
    %102 = vector.broadcast %c128_i32 : i32 to vector<8x128xi32>
    %103 = arith.select %101, %3, %102 : vector<8x128xi1>, vector<8x128xi32>
    %cst_49 = arith.constant dense<2147483647> : vector<8xi32>
    %104 = vector.multi_reduction <minsi>, %103, %cst_49 [1] : vector<8x128xi32> to vector<8xi32>
    %105 = vector.shape_cast %104 : vector<8xi32> to vector<8x1xi32>
    %106 = vector.broadcast %105 : vector<8x1xi32> to vector<8x128xi32>
    %107 = arith.cmpi eq, %3, %106 : vector<8x128xi32>
    %108 = arith.extui %107 : vector<8x128xi1> to vector<8x128xi32>
    %109 = arith.sitofp %108 : vector<8x128xi32> to vector<8x128xf32>
    %110 = arith.truncf %109 : vector<8x128xf32> to vector<8x128xbf16>
    %c0_50 = arith.constant 0 : index
    %c0_51 = arith.constant 0 : index
    %111 = vector.load %arg15[%c0_50, %c0_51] : memref<8x128xbf16, #tpu.memory_space<vmem>>, vector<8x128xbf16>
    tpu.vector_store %arg15[%c0_50, %c0_51], %110 {strides = array<i32>} : memref<8x128xbf16, #tpu.memory_space<vmem>>, vector<8x128xbf16>,
    %c7_i32 = arith.constant 7 : i32
    %112 = arith.cmpi eq, %arg1, %c7_i32 : i32
    %113 = arith.extui %112 : i1 to i32
    %c0_i32_52 = arith.constant 0 : i32
    %114 = arith.cmpi ne, %113, %c0_i32_52 : i32
    scf.if %114 {
      %c0_53 = arith.constant 0 : index
      %c0_54 = arith.constant 0 : index
      %c0_55 = arith.constant 0 : index
      %115 = vector.load %arg14[%c0_53, %c0_54, %c0_55] : memref<2x8x128xf32, #tpu.memory_space<vmem>>, vector<2x8x128xf32>
      %c0_56 = arith.constant 0 : index
      %c0_57 = arith.constant 0 : index
      %c0_58 = arith.constant 0 : index
      %116 = vector.load %arg13[%c0_56, %c0_57, %c0_58] : memref<2x8x128xf32, #tpu.memory_space<vmem>>, vector<2x8x128xf32>
      tpu.vector_store %arg13[%c0_56, %c0_57, %c0_58], %115 {strides = array<i32>} : memref<2x8x128xf32, #tpu.memory_space<vmem>>, vector<2x8x128xf32>,
    } else {
    }
    return
  }
  func.func @transform_0(%arg0: i32, %arg1: i32) -> (i32, i32) {
    %c0_i32 = arith.constant 0 : i32
    %c0_i32_0 = arith.constant 0 : i32
    %c0_i32_1 = arith.constant 0 : i32
    return %c0_i32, %c0_i32_0 : i32, i32
  }
  func.func @transform_1(%arg0: i32, %arg1: i32) -> (i32, i32) {
    %c0_i32 = arith.constant 0 : i32
    %c0_i32_0 = arith.constant 0 : i32
    %c0_i32_1 = arith.constant 0 : i32
    return %c0_i32, %c0_i32_0 : i32, i32
  }
  func.func @transform_2(%arg0: i32, %arg1: i32) -> (i32, i32) {
    %c0_i32 = arith.constant 0 : i32
    %c0_i32_0 = arith.constant 0 : i32
    %c0_i32_1 = arith.constant 0 : i32
    return %c0_i32, %c0_i32_0 : i32, i32
  }
  func.func @transform_3(%arg0: i32, %arg1: i32) -> (i32, i32) {
    %c0_i32 = arith.constant 0 : i32
    %c0_i32_0 = arith.constant 0 : i32
    %c0_i32_1 = arith.constant 0 : i32
    return %c0_i32, %c0_i32_0 : i32, i32
  }
  func.func @transform_4(%arg0: i32, %arg1: i32) -> (i32, i32) {
    %c0_i32 = arith.constant 0 : i32
    %c0_i32_0 = arith.constant 0 : i32
    %c0_i32_1 = arith.constant 0 : i32
    return %c0_i32, %c0_i32_0 : i32, i32
  }
  func.func @transform_5(%arg0: i32, %arg1: i32) -> (i32, i32) {
    %c0_i32 = arith.constant 0 : i32
    %c0_i32_0 = arith.constant 0 : i32
    %c0_i32_1 = arith.constant 0 : i32
    return %c0_i32, %c0_i32_0 : i32, i32
  }
  func.func @transform_6(%arg0: i32, %arg1: i32) -> (i32, i32) {
    %c0_i32 = arith.constant 0 : i32
    %c0_i32_0 = arith.constant 0 : i32
    %c0_i32_1 = arith.constant 0 : i32
    return %c0_i32, %c0_i32_0 : i32, i32
  }
  func.func @transform_7(%arg0: i32, %arg1: i32) -> (i32, i32) {
    %c0_i32 = arith.constant 0 : i32
    %c0_i32_0 = arith.constant 0 : i32
    %c0_i32_1 = arith.constant 0 : i32
    return %c0_i32, %c0_i32_0 : i32, i32
  }
  func.func @transform_8(%arg0: i32, %arg1: i32) -> (i32, i32) {
    %c0_i32 = arith.constant 0 : i32
    %c0_i32_0 = arith.constant 0 : i32
    %c0_i32_1 = arith.constant 0 : i32
    return %c0_i32, %c0_i32_0 : i32, i32
  }
  func.func @transform_9(%arg0: i32, %arg1: i32) -> (i32, i32, i32) {
    %c0_i32 = arith.constant 0 : i32
    %c0_i32_0 = arith.constant 0 : i32
    %c0_i32_1 = arith.constant 0 : i32
    return %c0_i32, %arg0, %c0_i32_0 : i32, i32, i32
  }
  func.func @transform_10(%arg0: i32, %arg1: i32) -> (i32, i32, i32) {
    %c0_i32 = arith.constant 0 : i32
    %c0_i32_0 = arith.constant 0 : i32
    return %arg1, %arg0, %c0_i32 : i32, i32, i32
  }
  func.func @transform_11(%arg0: i32, %arg1: i32) -> (i32, i32, i32) {
    %c0_i32 = arith.constant 0 : i32
    %c0_i32_0 = arith.constant 0 : i32
    %c0_i32_1 = arith.constant 0 : i32
    return %c0_i32, %arg0, %c0_i32_0 : i32, i32, i32
  }
}

</mosaic_0001>

<bundles_post_ra>
// kernel: decoder_gru_forward.1
= control target key start
LH: loop header
LB: loop body
LE: loop exit
PB: predicated region body
PF: predicated region fallthrough
CT: control target
= control target key end

     0   :  { %s2555_s17 = smov 0   ;;  %s2557_s18 = smov 0   ;;  %s3120_s0 = inlined_call_operand.vmem [shape: bf16[128,128], index: 0, kind: input, shape index: {}]   ;;  %s3121_s1 = inlined_call_operand.vmem [shape: bf16[128,512], index: 1, kind: input, shape index: {}]   ;;  %s3122_s2 = inlined_call_operand.vmem [shape: bf16[128,512], index: 2, kind: input, shape index: {}]   ;;  %s3123_s3 = inlined_call_operand.vmem [shape: f32[1,512], index: 3, kind: input, shape index: {}]   ;;  %s3124_s4 = inlined_call_operand.vmem [shape: bf16[128,512], index: 4, kind: input, shape index: {}]   ;;  %s3125_s5 = inlined_call_operand.vmem [shape: bf16[128,512], index: 5, kind: input, shape index: {}]   ;;  %s3126_s6 = inlined_call_operand.vmem [shape: f32[1,512], index: 6, kind: input, shape index: {}]   ;;  %s3127_s7 = inlined_call_operand.vmem [shape: bf16[128,128], index: 7, kind: input, shape index: {}]   ;;  %s3128_s8 = inlined_call_operand.vmem [shape: f32[1,128], index: 8, kind: input, shape index: {}]   ;;  %s3129_s9 = inlined_call_operand.vmem [shape: f32[2,8,128], index: 9, kind: input, shape index: {}]   ;;  %s3130_s10 = inlined_call_operand.vmem [shape: f32[8,8,128], index: 10, kind: output, shape index: {0}]   ;;  %s3131_s11 = inlined_call_operand.vmem [shape: f32[2,8,128], index: 11, kind: output, shape index: {1}]  }
   0x1   :  { %s2559_s19 = smov 0  }
   0x2 LB: > { %s31_s20 = sadd.s32 1, %s2485_s18  ;;  %p1991_p0 = scmp.ge.s32.totalorder %s2489_s19, 1  ;;  %s2489_s19 = sphi %s2559_s19, %s22_s19   ;;  %s2485_s18 = sphi %s2557_s18, %s3133_s18   ;;  %s2481_s17 = sphi %s2555_s17, %s3132_s17  }
   0x3   : > { %p32_p1 = scmp.ge.s32.totalorder %s31_s20, 8  ;;  %p353_p2 = scmp.lt.s32.totalorder %s2489_s19, 9 }
   0x5   : > { %s3135_s20 = smov (%p32_p1, %s31_s20), 0  ;;  %p354_p3 = pnand %p1991_p0, %p353_p2 }
   0x6   : > { %p402_p4 = scmp.lt.s32.totalorder (!%p354_p3), %s2481_s17, 7  ;;  %p1993_p5 = scmp.ne.s32.totalorder (!%p354_p3), %s2481_s17, 0 }
   0x7   : > { %357 = sbr.rel (%p354_p3) target bundleno = 1454 (0x5ae), region = 60 }
   0xe   : > { %s403_s21 = scalar_select %p402_p4, %s2481_s17, 7 }
   0xf   : > { %417 = sbr.rel (%p1993_p5) target bundleno = 24 (0x18), region = 64  ;;  %v422_v0 = vlaneseq (!%p1993_p5)  ;;  %v418_v1 = vld [vmem:[%s3129_s9] sm:$0xff] (!%p1993_p5)  ;;  %v419_v2 = vld [vmem:[%s3129_s9 + $0x8] sm:$0xff] (!%p1993_p5)  ;;  %v2491_v4 = vmov (!%p1993_p5), 0.0  }
  0x10   : > { %s1992_s22 = sshll.u32 %s403_s21, 3  ;;  %420 = vst [vmem:[#allocation2] sm:$0xff] (!%p1993_p5), %v418_v1  ;;  %421 = vst [vmem:[#allocation2 + $0x8] sm:$0xff] (!%p1993_p5), %v419_v2 }
  0x11   : > { %s2580_s25 = scalar_lea.vmem %s3130_s10, %s1992_s22  ;;  %v423_v3 = vand.u32 (!%p1993_p5), 127, %v422_v0 }
  0x13   : > { %424 = vst [vmem:[#allocation4] sm:$0xff] (!%p1993_p5), %v423_v3  ;;  %vm426_vm0 = vcmp.eq.s32.totalorder (!%p1993_p5), %v423_v3, 1 }
  0x14   : > { %v1994_v5 = vsel (!%p1993_p5), %vm426_vm0, 1.0, %v2491_v4 }
  0x15   : > { %v429_v6 = vpack.c.bf16 (!%p1993_p5), %v1994_v5, %v1994_v5 }
  0x17   : > { %430 = vst [vmem:[#allocation3] sm:$0xf] %v429_v6 }
  0x18 PF: > { %v2235_v7 = vld [vmem:[%s3120_s0] sm:$0xff]   ;;  %v2492_v8 = vmov 0.0   ;;  %v2236_v9 = vld [vmem:[%s3120_s0 + $0x8] sm:$0xff]   ;;  %vm2493_vm1 = vmmov 0   ;;  %v2494_v10 = vmov 0   ;;  %v2237_v11 = vld [vmem:[%s3120_s0 + $0x10] sm:$0xff]  }
  0x19   : > { %2167 = vmatprep.subr.bf16.mxu0 %v2492_v8  ;;  %2183 = vmatprep.mubr.msk.bf16.mxu0 %vm2493_vm1, %v2492_v8  ;;  %v2243_v12 = vld [vmem:[%s3122_s2 + $0x4] ss:$16 sps:$4 sm:$0xff]   ;;  %v2245_v13 = vld [vmem:[%s3122_s2] ss:$16 sps:$4 sm:$0xff]   ;;  %v2238_v14 = vld [vmem:[%s3120_s0 + $0x18] sm:$0xff]   ;;  %p2145_p6 = scmp.ne.s32.totalorder %s2481_s17, 7 }
  0x1a   : > { %2168 = vmatpush3.bf16.msra.mxu0 %v2235_v7  ;;  %796 = vmatprep.mubr.bf16.mxu1 %v2494_v10  ;;  %v2249_v15 = vld [vmem:[%s3122_s2 + $0x24] ss:$16 sps:$4 sm:$0xff]   ;;  %v2251_v16 = vld [vmem:[%s3122_s2 + $0x20] ss:$16 sps:$4 sm:$0xff]   ;;  %v2240_v21 = vld [vmem:[%s3120_s0 + $0x28] sm:$0xff]  }
  0x1b   : > { %2169 = vmatprep.subr.bf16.mxu0 %v2492_v8  ;;  %764 = vmatprep.subr.bf16.mxu1 %v2243_v12  ;;  %v2239_v17 = vld [vmem:[%s3120_s0 + $0x20] sm:$0xff]   ;;  %v2241_v24 = vld [vmem:[%s3120_s0 + $0x30] sm:$0xff]   ;;  %v2242_v27 = vld [vmem:[%s3120_s0 + $0x38] sm:$0xff]  }
  0x1c   : > { %765 = vmatpush1.bf16.msra.mxu1 %v2245_v13  ;;  %v2255_v18 = vld [vmem:[%s3122_s2 + $0x44] ss:$16 sps:$4 sm:$0xff]   ;;  %v2257_v19 = vld [vmem:[%s3122_s2 + $0x40] ss:$16 sps:$4 sm:$0xff]   ;;  %v2248_v28 = vld [vmem:[%s3122_s2 + $0xc] ss:$16 sps:$4 sm:$0xff]  }
  0x1d   : > { %766 = vmatprep.subr.bf16.mxu1 %v2249_v15  ;;  %v2261_v20 = vld [vmem:[%s3122_s2 + $0x64] ss:$16 sps:$4 sm:$0xff]   ;;  %v2263_v22 = vld [vmem:[%s3122_s2 + $0x60] ss:$16 sps:$4 sm:$0xff]   ;;  %v2246_v32 = vld [vmem:[%s3122_s2 + $0x8] ss:$16 sps:$4 sm:$0xff]  }
  0x1e   : > { %2170 = vmatpush3.bf16.msra.mxu0 %v2236_v9  ;;  %v2267_v23 = vld [vmem:[%s3122_s2 + $0x84] ss:$16 sps:$4 sm:$0xff]   ;;  %v2269_v25 = vld [vmem:[%s3122_s2 + $0x80] ss:$16 sps:$4 sm:$0xff]   ;;  %v2254_v33 = vld [vmem:[%s3122_s2 + $0x2c] ss:$16 sps:$4 sm:$0xff]  }
  0x1f   : > { %2171 = vmatprep.subr.bf16.mxu0 %v2492_v8  ;;  %v2273_v26 = vld [vmem:[%s3122_s2 + $0xa4] ss:$16 sps:$4 sm:$0xff]   ;;  %v2275_v29 = vld [vmem:[%s3122_s2 + $0xa0] ss:$16 sps:$4 sm:$0xff]   ;;  %v2252_v36 = vld [vmem:[%s3122_s2 + $0x28] ss:$16 sps:$4 sm:$0xff]  }
  0x20   : > { %767 = vmatpush1.bf16.msra.mxu1 %v2251_v16  ;;  %v432_v30 = vld [vmem:[#allocation3] sm:$0xf]  ;;  %v2279_v31 = vld [vmem:[%s3122_s2 + $0xc4] ss:$16 sps:$4 sm:$0xff]   ;;  %v2260_v37 = vld [vmem:[%s3122_s2 + $0x4c] ss:$16 sps:$4 sm:$0xff]  }
  0x21   : > { %768 = vmatprep.subr.bf16.mxu1 %v2255_v18  ;;  %v2281_v34 = vld [vmem:[%s3122_s2 + $0xc0] ss:$16 sps:$4 sm:$0xff]   ;;  %v2285_v35 = vld [vmem:[%s3122_s2 + $0xe4] ss:$16 sps:$4 sm:$0xff]   ;;  %v2258_v41 = vld [vmem:[%s3122_s2 + $0x48] ss:$16 sps:$4 sm:$0xff]  }
  0x22   : > { %2172 = vmatpush3.bf16.msra.mxu0 %v2237_v11  ;;  %v2287_v38 = vld [vmem:[%s3122_s2 + $0xe0] ss:$16 sps:$4 sm:$0xff]   ;;  %v2293_v40 = vld [vmem:[%s3121_s1 + $0x4] ss:$16 sps:$4 sm:$0xff]   ;;  %v2266_v42 = vld [vmem:[%s3122_s2 + $0x6c] ss:$16 sps:$4 sm:$0xff]  }
  0x23   : > { %2173 = vmatprep.subr.bf16.mxu0 %v2492_v8  ;;  %v2688_v39 = vld [vmem:[#allocation2] sm:$0xff]  ;;  %v2264_v46 = vld [vmem:[%s3122_s2 + $0x68] ss:$16 sps:$4 sm:$0xff]   ;;  %v2272_v47 = vld [vmem:[%s3122_s2 + $0x8c] ss:$16 sps:$4 sm:$0xff]  }
  0x24   : > { %769 = vmatpush1.bf16.msra.mxu1 %v2257_v19  ;;  %v571_v43 = vpack.c.bf16 %v2688_v39, %v2688_v39  ;;  %v2291_v44 = vld [vmem:[%s3121_s1] ss:$16 sps:$4 sm:$0xff]   ;;  %v2299_v45 = vld [vmem:[%s3121_s1 + $0x24] ss:$16 sps:$4 sm:$0xff]   ;;  %v2270_v50 = vld [vmem:[%s3122_s2 + $0x88] ss:$16 sps:$4 sm:$0xff]  }
  0x25   : > { %770 = vmatprep.subr.bf16.mxu1 %v2261_v20  ;;  %v2297_v48 = vld [vmem:[%s3121_s1 + $0x20] ss:$16 sps:$4 sm:$0xff]   ;;  %v2305_v49 = vld [vmem:[%s3121_s1 + $0x44] ss:$16 sps:$4 sm:$0xff]   ;;  %v2278_v51 = vld [vmem:[%s3122_s2 + $0xac] ss:$16 sps:$4 sm:$0xff]  }
  0x26   : > { %2174 = vmatpush3.bf16.msra.mxu0 %v2238_v14  ;;  %v2276_v52 = vld [vmem:[%s3122_s2 + $0xa8] ss:$16 sps:$4 sm:$0xff]   ;;  %v2303_v53 = vld [vmem:[%s3121_s1 + $0x40] ss:$16 sps:$4 sm:$0xff]   ;;  %v2284_v54 = vld [vmem:[%s3122_s2 + $0xcc] ss:$16 sps:$4 sm:$0xff]  }
  0x27   : > { %2175 = vmatprep.subr.bf16.mxu0 %v2492_v8  ;;  %v2311_v55 = vld [vmem:[%s3121_s1 + $0x64] ss:$16 sps:$4 sm:$0xff]   ;;  %v2309_v56 = vld [vmem:[%s3121_s1 + $0x60] ss:$16 sps:$4 sm:$0xff]   ;;  %v2282_v58 = vld [vmem:[%s3122_s2 + $0xc8] ss:$16 sps:$4 sm:$0xff]  }
  0x28   : > { %771 = vmatpush1.bf16.msra.mxu1 %v2263_v22  ;;  %v2317_v57 = vld [vmem:[%s3121_s1 + $0x84] ss:$16 sps:$4 sm:$0xff]   ;;  %v2290_v59 = vld [vmem:[%s3122_s2 + $0xec] ss:$16 sps:$4 sm:$0xff]   ;;  %v2315_v60 = vld [vmem:[%s3121_s1 + $0x80] ss:$16 sps:$4 sm:$0xff]  }
  0x29   : > { %772 = vmatprep.subr.bf16.mxu1 %v2267_v23  ;;  %v2323_v61 = vld [vmem:[%s3121_s1 + $0xa4] ss:$16 sps:$4 sm:$0xff]   ;;  %v2288_v62 = vld [vmem:[%s3122_s2 + $0xe8] ss:$16 sps:$4 sm:$0xff]   ;;  %v2296_v63 = vld [vmem:[%s3121_s1 + $0xc] ss:$16 sps:$4 sm:$0xff]  }
  0x2a   : > { %2176 = vmatpush3.bf16.msra.mxu0 %v2239_v17  ;;  %v2321_v0 = vld [vmem:[%s3121_s1 + $0xa0] ss:$16 sps:$4 sm:$0xff]   ;;  %v2329_v1 = vld [vmem:[%s3121_s1 + $0xc4] ss:$16 sps:$4 sm:$0xff]   ;;  %v2294_v2 = vld [vmem:[%s3121_s1 + $0x8] ss:$16 sps:$4 sm:$0xff]  }
  0x2b   : > { %2177 = vmatprep.subr.bf16.mxu0 %v2492_v8  ;;  %v2302_v3 = vld [vmem:[%s3121_s1 + $0x2c] ss:$16 sps:$4 sm:$0xff]   ;;  %v2327_v4 = vld [vmem:[%s3121_s1 + $0xc0] ss:$16 sps:$4 sm:$0xff]   ;;  %v2335_v5 = vld [vmem:[%s3121_s1 + $0xe4] ss:$16 sps:$4 sm:$0xff]  }
  0x2c   : > { %773 = vmatpush1.bf16.msra.mxu1 %v2269_v25  ;;  %v2300_v6 = vld [vmem:[%s3121_s1 + $0x28] ss:$16 sps:$4 sm:$0xff]   ;;  %v2308_v7 = vld [vmem:[%s3121_s1 + $0x4c] ss:$16 sps:$4 sm:$0xff]   ;;  %v2333_v9 = vld [vmem:[%s3121_s1 + $0xe0] ss:$16 sps:$4 sm:$0xff]  }
  0x2d   : > { %774 = vmatprep.subr.bf16.mxu1 %v2273_v26  ;;  %v2306_v11 = vld [vmem:[%s3121_s1 + $0x48] ss:$16 sps:$4 sm:$0xff]   ;;  %v2314_v12 = vld [vmem:[%s3121_s1 + $0x6c] ss:$16 sps:$4 sm:$0xff]   ;;  %v2341_v22 = vld [vmem:[%s3125_s5 + $0x4] ss:$16 sps:$4 sm:$0xff]  }
  0x2e   : > { %2178 = vmatpush3.bf16.msra.mxu0 %v2240_v21  ;;  %v2312_v13 = vld [vmem:[%s3121_s1 + $0x68] ss:$16 sps:$4 sm:$0xff]   ;;  %v2320_v14 = vld [vmem:[%s3121_s1 + $0x8c] ss:$16 sps:$4 sm:$0xff]   ;;  %v2339_v25 = vld [vmem:[%s3125_s5] ss:$16 sps:$4 sm:$0xff]  }
  0x2f   : > { %2179 = vmatprep.subr.bf16.mxu0 %v2492_v8  ;;  %v2318_v15 = vld [vmem:[%s3121_s1 + $0x88] ss:$16 sps:$4 sm:$0xff]   ;;  %v2326_v16 = vld [vmem:[%s3121_s1 + $0xac] ss:$16 sps:$4 sm:$0xff]  }
  0x30   : > { %775 = vmatpush1.bf16.msra.mxu1 %v2275_v29  ;;  %v2324_v17 = vld [vmem:[%s3121_s1 + $0xa8] ss:$16 sps:$4 sm:$0xff]   ;;  %v2332_v18 = vld [vmem:[%s3121_s1 + $0xcc] ss:$16 sps:$4 sm:$0xff]   ;;  %v2347_v29 = vld [vmem:[%s3125_s5 + $0x24] ss:$16 sps:$4 sm:$0xff]  }
  0x31   : > { %776 = vmatprep.subr.bf16.mxu1 %v2279_v31  ;;  %v2330_v19 = vld [vmem:[%s3121_s1 + $0xc8] ss:$16 sps:$4 sm:$0xff]   ;;  %v2338_v20 = vld [vmem:[%s3121_s1 + $0xec] ss:$16 sps:$4 sm:$0xff]  }
  0x32   : > { %2180 = vmatpush3.bf16.msra.mxu0 %v2241_v24  ;;  %v2336_v21 = vld [vmem:[%s3121_s1 + $0xe8] ss:$16 sps:$4 sm:$0xff]   ;;  %v2344_v23 = vld [vmem:[%s3125_s5 + $0xc] ss:$16 sps:$4 sm:$0xff]  }
  0x33   : > { %2181 = vmatprep.subr.bf16.mxu0 %v2492_v8  ;;  %v2342_v26 = vld [vmem:[%s3125_s5 + $0x8] ss:$16 sps:$4 sm:$0xff]  }
  0x34   : > { %777 = vmatpush1.bf16.msra.mxu1 %v2281_v34  ;;  %v2348_v34 = vld [vmem:[%s3125_s5 + $0x28] ss:$16 sps:$4 sm:$0xff]  }
  0x35   : > { %778 = vmatprep.subr.bf16.mxu1 %v2285_v35  ;;  %v2353_v35 = vld [vmem:[%s3125_s5 + $0x44] ss:$16 sps:$4 sm:$0xff]  }
  0x36   : > { %2182 = vmatpush3.bf16.msra.mxu0 %v2242_v27 }
  0x37   : > { %805 = vmatprep.subr.bf16.mxu0 %v2248_v28 }
  0x38   : > { %779 = vmatpush1.bf16.msra.mxu1 %v2287_v38  ;;  %v2354_v38 = vld [vmem:[%s3125_s5 + $0x48] ss:$16 sps:$4 sm:$0xff]  }
  0x39   : > { %2184 = vmatmul.mubr.bf16.vlgmr.msra.gmra.mrb[0].mxu0 %v432_v30  ;;  %1006 = vmatprep.subr.bf16.mxu1 %v2293_v40  ;;  %v2350_v30 = vld [vmem:[%s3125_s5 + $0x2c] ss:$16 sps:$4 sm:$0xff]   ;;  %v2359_v40 = vld [vmem:[%s3125_s5 + $0x64] ss:$16 sps:$4 sm:$0xff]  }
  0x3a   : > { %806 = vmatpush1.bf16.msra.mxu0 %v2246_v32  ;;  %837 = vmatprep.mubr.bf16.mxu0 %v2494_v10 }
  0x3b   : > { %807 = vmatprep.subr.bf16.mxu0 %v2254_v33  ;;  %797 = vmatmul.mubr.bf16.vlgmr.msra.gmra.mrb[0].mxu1 %v571_v43  ;;  %v2345_v33 = vld [vmem:[%s3125_s5 + $0x20] ss:$16 sps:$4 sm:$0xff]  }
  0x3c   : > { %1007 = vmatpush1.bf16.msra.mxu1 %v2291_v44  ;;  %1038 = vmatprep.mubr.bf16.mxu1 %v2494_v10  ;;  %v2357_v44 = vld [vmem:[%s3125_s5 + $0x60] ss:$16 sps:$4 sm:$0xff]  }
  0x3d   : > { %1008 = vmatprep.subr.bf16.mxu1 %v2299_v45 }
  0x3e   : > { %808 = vmatpush1.bf16.msra.mxu0 %v2252_v36  ;;  %v2356_v36 = vld [vmem:[%s3125_s5 + $0x4c] ss:$16 sps:$4 sm:$0xff]  }
  0x3f   : > { %809 = vmatprep.subr.bf16.mxu0 %v2260_v37  ;;  %v2351_v37 = vld [vmem:[%s3125_s5 + $0x40] ss:$16 sps:$4 sm:$0xff]  }
  0x40   : > { %1009 = vmatpush1.bf16.msra.mxu1 %v2297_v48 }
  0x41   : > { %1010 = vmatprep.subr.bf16.mxu1 %v2305_v49 }
  0x42   : > { %810 = vmatpush1.bf16.msra.mxu0 %v2258_v41 }
  0x43   : > { %811 = vmatprep.subr.bf16.mxu0 %v2266_v42 }
  0x44   : > { %1011 = vmatpush1.bf16.msra.mxu1 %v2303_v53  ;;  %v2363_v53 = vld [vmem:[%s3125_s5 + $0x80] ss:$16 sps:$4 sm:$0xff]  }
  0x45   : > { %1012 = vmatprep.subr.bf16.mxu1 %v2311_v55  ;;  %v2366_v55 = vld [vmem:[%s3125_s5 + $0x88] ss:$16 sps:$4 sm:$0xff]  }
  0x46   : > { %812 = vmatpush1.bf16.msra.mxu0 %v2264_v46 }
  0x47   : > { %813 = vmatprep.subr.bf16.mxu0 %v2272_v47 }
  0x48   : > { %1013 = vmatpush1.bf16.msra.mxu1 %v2309_v56  ;;  %v2371_v56 = vld [vmem:[%s3125_s5 + $0xa4] ss:$16 sps:$4 sm:$0xff]  }
  0x49   : > { %1014 = vmatprep.subr.bf16.mxu1 %v2317_v57  ;;  %v2369_v57 = vld [vmem:[%s3125_s5 + $0xa0] ss:$16 sps:$4 sm:$0xff]  }
  0x4a   : > { %814 = vmatpush1.bf16.msra.mxu0 %v2270_v50  ;;  %v2362_v50 = vld [vmem:[%s3125_s5 + $0x6c] ss:$16 sps:$4 sm:$0xff]  }
  0x4b   : > { %815 = vmatprep.subr.bf16.mxu0 %v2278_v51  ;;  %v2360_v51 = vld [vmem:[%s3125_s5 + $0x68] ss:$16 sps:$4 sm:$0xff]  }
  0x4c   : > { %1015 = vmatpush1.bf16.msra.mxu1 %v2315_v60  ;;  %v2377_v60 = vld [vmem:[%s3125_s5 + $0xc4] ss:$16 sps:$4 sm:$0xff]  }
  0x4d   : > { %1016 = vmatprep.subr.bf16.mxu1 %v2323_v61  ;;  %v2375_v61 = vld [vmem:[%s3125_s5 + $0xc0] ss:$16 sps:$4 sm:$0xff]  }
  0x4e   : > { %816 = vmatpush1.bf16.msra.mxu0 %v2276_v52  ;;  %v2365_v52 = vld [vmem:[%s3125_s5 + $0x84] ss:$16 sps:$4 sm:$0xff]  }
  0x4f   : > { %817 = vmatprep.subr.bf16.mxu0 %v2284_v54  ;;  %v2368_v54 = vld [vmem:[%s3125_s5 + $0x8c] ss:$16 sps:$4 sm:$0xff]  }
  0x50   : > { %1017 = vmatpush1.bf16.msra.mxu1 %v2321_v0  ;;  %v2383_v0 = vld [vmem:[%s3125_s5 + $0xe4] ss:$16 sps:$4 sm:$0xff]  }
  0x51   : > { %1018 = vmatprep.subr.bf16.mxu1 %v2329_v1  ;;  %v2381_v1 = vld [vmem:[%s3125_s5 + $0xe0] ss:$16 sps:$4 sm:$0xff]  }
  0x52   : > { %818 = vmatpush1.bf16.msra.mxu0 %v2282_v58  ;;  %v2374_v58 = vld [vmem:[%s3125_s5 + $0xac] ss:$16 sps:$4 sm:$0xff]  }
  0x53   : > { %819 = vmatprep.subr.bf16.mxu0 %v2290_v59  ;;  %v2372_v59 = vld [vmem:[%s3125_s5 + $0xa8] ss:$16 sps:$4 sm:$0xff]  }
  0x54   : > { %1019 = vmatpush1.bf16.msra.mxu1 %v2327_v4  ;;  %v2929_v4 = vld [vmem:[#allocation2 + $0x8] sm:$0xff] }
  0x55   : > { %1020 = vmatprep.subr.bf16.mxu1 %v2335_v5  ;;  %v1169_v5 = vpack.c.bf16 %v2929_v4, %v2929_v4 }
  0x56   : > { %820 = vmatpush1.bf16.msra.mxu0 %v2288_v62  ;;  %v2380_v62 = vld [vmem:[%s3125_s5 + $0xcc] ss:$16 sps:$4 sm:$0xff]  }
  0x57   : > { %1047 = vmatprep.subr.bf16.mxu0 %v2296_v63  ;;  %v2378_v63 = vld [vmem:[%s3125_s5 + $0xc8] ss:$16 sps:$4 sm:$0xff]  }
  0x58   : > { %1021 = vmatpush1.bf16.msra.mxu1 %v2333_v9  ;;  %v2387_v9 = vld [vmem:[%s3124_s4] ss:$16 sps:$4 sm:$0xff]  }
  0x59   : > { %838 = vmatmul.mubr.bf16.vlgmr.msra.gmra.mrb[4].mxu0 %v571_v43  ;;  %1362 = vmatprep.subr.bf16.mxu1 %v2341_v22  ;;  %v2408_v22 = vld [vmem:[%s3124_s4 + $0x68] ss:$16 sps:$4 sm:$0xff]  }
  0x5a   : > { %1048 = vmatpush1.bf16.msra.mxu0 %v2294_v2  ;;  %1079 = vmatprep.mubr.bf16.mxu0 %v2494_v10  ;;  %v2386_v2 = vld [vmem:[%s3125_s5 + $0xec] ss:$16 sps:$4 sm:$0xff]  }
  0x5b   : > { %1049 = vmatprep.subr.bf16.mxu0 %v2302_v3  ;;  %v2384_v3 = vld [vmem:[%s3125_s5 + $0xe8] ss:$16 sps:$4 sm:$0xff]  }
  0x5e   : > { %1050 = vmatpush1.bf16.msra.mxu0 %v2300_v6  ;;  %v2389_v6 = vld [vmem:[%s3124_s4 + $0x4] ss:$16 sps:$4 sm:$0xff]  }
  0x5f   : > { %1051 = vmatprep.subr.bf16.mxu0 %v2308_v7  ;;  %v2392_v7 = vld [vmem:[%s3124_s4 + $0xc] ss:$16 sps:$4 sm:$0xff]  }
  0x62   : > { %1052 = vmatpush1.bf16.msra.mxu0 %v2306_v11  ;;  %v2390_v11 = vld [vmem:[%s3124_s4 + $0x8] ss:$16 sps:$4 sm:$0xff]  }
  0x63   : > { %1053 = vmatprep.subr.bf16.mxu0 %v2314_v12  ;;  %v2395_v12 = vld [vmem:[%s3124_s4 + $0x24] ss:$16 sps:$4 sm:$0xff]  }
  0x66   : > { %1054 = vmatpush1.bf16.msra.mxu0 %v2312_v13  ;;  %v2398_v13 = vld [vmem:[%s3124_s4 + $0x2c] ss:$16 sps:$4 sm:$0xff]  }
  0x67   : > { %1055 = vmatprep.subr.bf16.mxu0 %v2320_v14  ;;  %v2393_v14 = vld [vmem:[%s3124_s4 + $0x20] ss:$16 sps:$4 sm:$0xff]  }
  0x6a   : > { %1056 = vmatpush1.bf16.msra.mxu0 %v2318_v15  ;;  %v2396_v15 = vld [vmem:[%s3124_s4 + $0x28] ss:$16 sps:$4 sm:$0xff]  }
  0x6b   : > { %1057 = vmatprep.subr.bf16.mxu0 %v2326_v16  ;;  %v2401_v16 = vld [vmem:[%s3124_s4 + $0x44] ss:$16 sps:$4 sm:$0xff]  }
  0x6e   : > { %1058 = vmatpush1.bf16.msra.mxu0 %v2324_v17  ;;  %v2399_v17 = vld [vmem:[%s3124_s4 + $0x40] ss:$16 sps:$4 sm:$0xff]  }
  0x6f   : > { %1059 = vmatprep.subr.bf16.mxu0 %v2332_v18  ;;  %v2402_v18 = vld [vmem:[%s3124_s4 + $0x48] ss:$16 sps:$4 sm:$0xff]  }
  0x72   : > { %1060 = vmatpush1.bf16.msra.mxu0 %v2330_v19  ;;  %v2407_v19 = vld [vmem:[%s3124_s4 + $0x64] ss:$16 sps:$4 sm:$0xff]  }
  0x73   : > { %1061 = vmatprep.subr.bf16.mxu0 %v2338_v20  ;;  %v2410_v20 = vld [vmem:[%s3124_s4 + $0x6c] ss:$16 sps:$4 sm:$0xff]  }
  0x76   : > { %1062 = vmatpush1.bf16.msra.mxu0 %v2336_v21  ;;  %v2405_v21 = vld [vmem:[%s3124_s4 + $0x60] ss:$16 sps:$4 sm:$0xff]  }
  0x77   : > { %1403 = vmatprep.subr.bf16.mxu0 %v2344_v23  ;;  %v2413_v23 = vld [vmem:[%s3124_s4 + $0x84] ss:$16 sps:$4 sm:$0xff]  }
 0x10c   : > { %v531_v24 = vpop.f32.mrb[0].mxu0 }
 0x10d   : > { %v538_v27 = vpack.c.bf16 %v531_v24, %v531_v24  ;;  %v2185_v28 = vpop.f32.mrb[1].mxu0  ;;  %v2416_v24 = vld [vmem:[%s3124_s4 + $0x8c] ss:$16 sps:$4 sm:$0xff]  }
 0x10e   : > { %v534_v31 = vpop.f32.mrb[2].mxu0  ;;  %v2864_v41 = vpop.f32.mrb[0].mxu1  ;;  %v2422_v28 = vld [vmem:[%s3124_s4 + $0xac] ss:$16 sps:$4 sm:$0xff]  }
 0x10f   : > { %v2186_v32 = vpop.f32.mrb[3].mxu0  ;;  %1039 = vmatmul.mubr.bf16.vlgmr.msra.gmra.mrb[4].mxu1 %v538_v27  ;;  %1080 = vmatmul.mubr.bf16.vlgmr.msra.gmra.mrb[8].mxu0 %v538_v27  ;;  %v2866_v42 = vpop.f32.mrb[1].mxu1  ;;  %v2419_v27 = vld [vmem:[%s3124_s4 + $0xa4] ss:$16 sps:$4 sm:$0xff]  }
 0x110   : > { %1363 = vmatpush1.bf16.msra.mxu1 %v2339_v25  ;;  %1404 = vmatpush1.bf16.msra.mxu0 %v2342_v26  ;;  %v802_v43 = vpop.f32.mrb[2].mxu1  ;;  %v2411_v25 = vld [vmem:[%s3124_s4 + $0x80] ss:$16 sps:$4 sm:$0xff]   ;;  %v2414_v26 = vld [vmem:[%s3124_s4 + $0x88] ss:$16 sps:$4 sm:$0xff]  }
 0x111   : > { %1364 = vmatprep.subr.bf16.mxu1 %v2347_v29  ;;  %1405 = vmatprep.subr.bf16.mxu0 %v2350_v30  ;;  %v803_v45 = vpop.f32.mrb[3].mxu1  ;;  %v2417_v29 = vld [vmem:[%s3124_s4 + $0xa0] ss:$16 sps:$4 sm:$0xff]   ;;  %v2420_v30 = vld [vmem:[%s3124_s4 + $0xa8] ss:$16 sps:$4 sm:$0xff]  }
 0x112   : > { %1394 = vmatprep.mubr.bf16.mxu1 %v2494_v10  ;;  %1435 = vmatprep.mubr.bf16.mxu0 %v2494_v10  ;;  %v2425_v31 = vld [vmem:[%s3124_s4 + $0xc4] ss:$16 sps:$4 sm:$0xff]   ;;  %v2428_v32 = vld [vmem:[%s3124_s4 + $0xcc] ss:$16 sps:$4 sm:$0xff]   ;;  %v1088_v45 = vld [vmem:[%s3123_s3] sm:$0xf] }
 0x114   : > { %1365 = vmatpush1.bf16.msra.mxu1 %v2345_v33  ;;  %1406 = vmatpush1.bf16.msra.mxu0 %v2348_v34  ;;  %v2423_v33 = vld [vmem:[%s3124_s4 + $0xc0] ss:$16 sps:$4 sm:$0xff]   ;;  %v2426_v34 = vld [vmem:[%s3124_s4 + $0xc8] ss:$16 sps:$4 sm:$0xff]  }
 0x115   : > { %1366 = vmatprep.subr.bf16.mxu1 %v2353_v35  ;;  %1407 = vmatprep.subr.bf16.mxu0 %v2356_v36  ;;  %v2431_v35 = vld [vmem:[%s3124_s4 + $0xe4] ss:$16 sps:$4 sm:$0xff]   ;;  %v2434_v36 = vld [vmem:[%s3124_s4 + $0xec] ss:$16 sps:$4 sm:$0xff]  }
 0x118   : > { %1367 = vmatpush1.bf16.msra.mxu1 %v2351_v37  ;;  %1408 = vmatpush1.bf16.msra.mxu0 %v2354_v38  ;;  %v2429_v37 = vld [vmem:[%s3124_s4 + $0xe0] ss:$16 sps:$4 sm:$0xff]   ;;  %v2432_v38 = vld [vmem:[%s3124_s4 + $0xe8] ss:$16 sps:$4 sm:$0xff]  }
 0x119   : > { %1368 = vmatprep.subr.bf16.mxu1 %v2359_v40  ;;  %1409 = vmatprep.subr.bf16.mxu0 %v2362_v50  ;;  %v1090_v40 = vlaneseq }
 0x11b   : > { %v3032_v43 = vshrl.u32 %v1090_v40, 7 }
 0x11c   : > { %1369 = vmatpush1.bf16.msra.mxu1 %v2357_v44  ;;  %1410 = vmatpush1.bf16.msra.mxu0 %v2360_v51 }
 0x11d   : > { %1370 = vmatprep.subr.bf16.mxu1 %v2365_v52  ;;  %1411 = vmatprep.subr.bf16.mxu0 %v2368_v54  ;;  %v1092_v44 = vsub.s32 0, %v3032_v43 }
 0x120   : > { %1371 = vmatpush1.bf16.msra.mxu1 %v2363_v53  ;;  %1412 = vmatpush1.bf16.msra.mxu0 %v2366_v55 }
 0x121   : > { %1372 = vmatprep.subr.bf16.mxu1 %v2371_v56  ;;  %1413 = vmatprep.subr.bf16.mxu0 %v2374_v58 }
 0x124   : > { %1373 = vmatpush1.bf16.msra.mxu1 %v2369_v57  ;;  %1414 = vmatpush1.bf16.msra.mxu0 %v2372_v59 }
 0x125   : > { %1374 = vmatprep.subr.bf16.mxu1 %v2377_v60  ;;  %1415 = vmatprep.subr.bf16.mxu0 %v2380_v62 }
 0x128   : > { %1375 = vmatpush1.bf16.msra.mxu1 %v2375_v61  ;;  %1416 = vmatpush1.bf16.msra.mxu0 %v2378_v63 }
 0x129   : > { %1376 = vmatprep.subr.bf16.mxu1 %v2383_v0  ;;  %1417 = vmatprep.subr.bf16.mxu0 %v2386_v2 }
 0x12c   : > { %v2871_v46 = vpop.f32.mrb[4].mxu0  ;;  %1377 = vmatpush1.bf16.msra.mxu1 %v2381_v1  ;;  %1418 = vmatpush1.bf16.msra.mxu0 %v2384_v3  ;;  %v1100_v3 = vsub.s32 2, %v3032_v43 }
 0x12d   : > { %v2873_v47 = vpop.f32.mrb[5].mxu0  ;;  %1604 = vmatprep.subr.bf16.mxu1 %v2389_v6  ;;  %1645 = vmatprep.subr.bf16.mxu0 %v2392_v7 }
 0x12e   : > { %v843_v48 = vpop.f32.mrb[6].mxu0  ;;  %v1101_v6 = vrot.slane %v1088_v45, %v1100_v3 }
 0x12f   : > { %v844_v49 = vpop.f32.mrb[7].mxu0  ;;  %1395 = vmatmul.mubr.bf16.vlgmr.msra.gmra.mrb[8].mxu1 %v1169_v5  ;;  %1436 = vmatmul.mubr.bf16.vlgmr.msra.gmra.mrb[12].mxu0 %v1169_v5  ;;  %v1096_v48 = vsub.s32 1, %v3032_v43 }
 0x130   : > { %1636 = vmatprep.mubr.bf16.mxu1 %v2494_v10  ;;  %1605 = vmatpush1.bf16.msra.mxu1 %v2387_v9  ;;  %v1093_v49 = vrot.slane %v1088_v45, %v1092_v44 }
 0x131   : > { %1646 = vmatpush1.bf16.msra.mxu0 %v2390_v11  ;;  %1677 = vmatprep.mubr.bf16.mxu0 %v2494_v10  ;;  %v2404_v10 = vld [vmem:[%s3124_s4 + $0x4c] ss:$16 sps:$4 sm:$0xff]   ;;  %v1097_v57 = vrot.slane %v1088_v45, %v1096_v48 }
 0x132   : > { %1606 = vmatprep.subr.bf16.mxu1 %v2395_v12  ;;  %1647 = vmatprep.subr.bf16.mxu0 %v2398_v13 }
 0x134   : > { %1607 = vmatpush1.bf16.msra.mxu1 %v2393_v14 }
 0x135   : > { %1648 = vmatpush1.bf16.msra.mxu0 %v2396_v15  ;;  %1608 = vmatprep.subr.bf16.mxu1 %v2401_v16 }
 0x136   : > { %1649 = vmatprep.subr.bf16.mxu0 %v2404_v10 }
 0x138   : > { %1609 = vmatpush1.bf16.msra.mxu1 %v2399_v17 }
 0x139   : > { %1650 = vmatpush1.bf16.msra.mxu0 %v2402_v18  ;;  %1610 = vmatprep.subr.bf16.mxu1 %v2407_v19 }
 0x13a   : > { %1651 = vmatprep.subr.bf16.mxu0 %v2410_v20 }
 0x13c   : > { %1611 = vmatpush1.bf16.msra.mxu1 %v2405_v21 }
 0x13d   : > { %1652 = vmatpush1.bf16.msra.mxu0 %v2408_v22  ;;  %1612 = vmatprep.subr.bf16.mxu1 %v2413_v23 }
 0x13e   : > { %1653 = vmatprep.subr.bf16.mxu0 %v2416_v24 }
 0x140   : > { %1613 = vmatpush1.bf16.msra.mxu1 %v2411_v25 }
 0x141   : > { %1654 = vmatpush1.bf16.msra.mxu0 %v2414_v26  ;;  %1614 = vmatprep.subr.bf16.mxu1 %v2419_v27 }
 0x142   : > { %1655 = vmatprep.subr.bf16.mxu0 %v2422_v28 }
 0x144   : > { %1615 = vmatpush1.bf16.msra.mxu1 %v2417_v29  ;;  %v2436_v29 = vld [vmem:[%s3127_s7 + $0x8] sm:$0xff]  }
 0x145   : > { %1656 = vmatpush1.bf16.msra.mxu0 %v2420_v30  ;;  %1616 = vmatprep.subr.bf16.mxu1 %v2425_v31  ;;  %v2437_v30 = vld [vmem:[%s3127_s7 + $0x10] sm:$0xff]   ;;  %v2438_v31 = vld [vmem:[%s3127_s7 + $0x18] sm:$0xff]  }
 0x146   : > { %1657 = vmatprep.subr.bf16.mxu0 %v2428_v32  ;;  %v2439_v32 = vld [vmem:[%s3127_s7 + $0x20] sm:$0xff]  }
 0x148   : > { %1617 = vmatpush1.bf16.msra.mxu1 %v2423_v33  ;;  %v2440_v33 = vld [vmem:[%s3127_s7 + $0x28] sm:$0xff]  }
 0x149   : > { %1658 = vmatpush1.bf16.msra.mxu0 %v2426_v34  ;;  %1618 = vmatprep.subr.bf16.mxu1 %v2431_v35  ;;  %v2441_v34 = vld [vmem:[%s3127_s7 + $0x30] sm:$0xff]   ;;  %v2442_v35 = vld [vmem:[%s3127_s7 + $0x38] sm:$0xff]  }
 0x14a   : > { %1659 = vmatprep.subr.bf16.mxu0 %v2434_v36  ;;  %v1686_v36 = vld [vmem:[%s3126_s6] sm:$0xf] }
 0x14c   : > { %1619 = vmatpush1.bf16.msra.mxu1 %v2429_v37  ;;  %v1691_v37 = vrot.slane %v1686_v36, %v1092_v44 }
 0x14d   : > { %1660 = vmatpush1.bf16.msra.mxu0 %v2432_v38  ;;  %2187 = vmatprep.subr.bf16.mxu1 %v2492_v8 }
 0x1e2   : > { %v1040_v50 = vpop.f32.mrb[4].mxu1  ;;  %v1081_v51 = vpop.f32.mrb[8].mxu0 }
 0x1e3   : > { %v1041_v52 = vadd.f32 %v1040_v50, %v2864_v41  ;;  %v1082_v53 = vadd.f32 %v1081_v51, %v2871_v46  ;;  %v1042_v54 = vpop.f32.mrb[5].mxu1  ;;  %v1083_v55 = vpop.f32.mrb[9].mxu0 }
 0x1e4   : > { %v1043_v56 = vadd.f32 %v1042_v54, %v2866_v42  ;;  %v1084_v58 = vadd.f32 %v1083_v55, %v2873_v47  ;;  %v1044_v59 = vpop.f32.mrb[6].mxu1  ;;  %v1085_v60 = vpop.f32.mrb[10].mxu0  ;;  %v1104_v42 = vsub.s32 3, %v3032_v43  ;;  %v2135_v43 = vld [vmem:[%s3128_s8] ss:$0 sm:$0xff] }
 0x1e5   : > { %v1110_v61 = vadd.f32 %v1093_v49, %v1041_v52  ;;  %v1045_v62 = vpop.f32.mrb[7].mxu1  ;;  %v1086_v63 = vpop.f32.mrb[11].mxu0  ;;  %v1112_v12 = vadd.f32 %v1101_v6, %v1082_v53  ;;  %v1695_v53 = vrot.slane %v1686_v36, %v1096_v48  ;;  %v1699_v48 = vrot.slane %v1686_v36, %v1100_v3 }
 0x1e6   : > { %v1111_v1 = vadd.f32 %v1097_v57, %v1043_v56  ;;  %v1105_v47 = vrot.slane %v1088_v45, %v1104_v42 }
 0x1e7   : > { %v2067_v0 = vmul.f32 -1.442695, %v1110_v61 }
 0x1e8   : > { %v2068_v41 = vmul.f32 -1.442695, %v1111_v1  ;;  %v1113_v9 = vadd.f32 %v1105_v47, %v1084_v58  ;;  %v1703_v1 = vrot.slane %v1686_v36, %v1104_v42 }
 0x1e9   : > { %2443 = vpow2.f32 %v2067_v0 }
 0x1ea   : > { %2445 = vpow2.f32 %v2068_v41 }
 0x1f3   : > { %v2444_v46 = vpop.eup %2443 }
 0x1f4   : > { %v1117_v2 = vadd.f32 1.0, %v2444_v46  ;;  %v2446_v5 = vpop.eup %2445 }
 0x1f5   : > { %v1123_v7 = vadd.f32 1.0, %v2446_v5 }
 0x1f6   : > { %2447 = vrcp.f32 %v1117_v2 }
 0x1f7   : > { %2449 = vrcp.f32 %v1123_v7 }
 0x200   : > { %v2448_v11 = vpop.eup %2447 }
 0x201   : > { %v1126_v13 = vmul.f32 %v2448_v11, %v1113_v9  ;;  %v2450_v15 = vpop.eup %2449 }
 0x202   : > { %v1129_v16 = vsub.f32 1.0, %v2450_v15  ;;  %v1131_v18 = vmul.f32 %v2450_v15, %v2688_v39  ;;  %v1396_v21 = vpop.f32.mrb[8].mxu1  ;;  %v1437_v25 = vpop.f32.mrb[12].mxu0  ;;  %v2435_v39 = vld [vmem:[%s3127_s7] sm:$0xff]  }
 0x203   : > { %v1127_v14 = vadd.f32 %v1126_v13, %v1112_v12  ;;  %v1398_v22 = vpop.f32.mrb[9].mxu1  ;;  %v1439_v26 = vpop.f32.mrb[13].mxu0 }
 0x204   : > { %v1400_v23 = vpop.f32.mrb[10].mxu1  ;;  %v1441_v27 = vpop.f32.mrb[14].mxu0 }
 0x205   : > { %2451 = vtanh.f32 %v1127_v14  ;;  %v1401_v24 = vpop.f32.mrb[11].mxu1  ;;  %v1442_v28 = vpop.f32.mrb[15].mxu0 }
 0x20f   : > { %v2452_v10 = vpop.eup %2451 }
 0x210   : > { %v1130_v17 = vmul.f32 %v2452_v10, %v1129_v16 }
 0x212   : > { %v1132_v19 = vadd.f32 %v1131_v18, %v1130_v17  ;;  %v431_v18 = vld [vmem:[#allocation4] sm:$0xff] }
 0x214   : > { %1133 = vst [vmem:[#allocation2] sm:$0xff] %v1132_v19  ;;  %v1136_v20 = vpack.c.bf16 %v1132_v19, %v1132_v19 }
 0x216   : > { %1637 = vmatmul.mubr.bf16.vlgmr.msra.gmra.mrb[12].mxu1 %v1136_v20  ;;  %1678 = vmatmul.mubr.bf16.vlgmr.msra.gmra.mrb[16].mxu0 %v1136_v20 }
 0x217   : > { %2203 = vmatprep.mubr.msk.bf16.mxu1 %vm2493_vm1, %v2492_v8  ;;  %2188 = vmatpush3.bf16.msra.mxu1 %v2435_v39 }
 0x218   : > { %2189 = vmatprep.subr.bf16.mxu1 %v2492_v8 }
 0x21b   : > { %2190 = vmatpush3.bf16.msra.mxu1 %v2436_v29 }
 0x21c   : > { %2191 = vmatprep.subr.bf16.mxu1 %v2492_v8 }
 0x21f   : > { %2192 = vmatpush3.bf16.msra.mxu1 %v2437_v30 }
 0x220   : > { %2193 = vmatprep.subr.bf16.mxu1 %v2492_v8 }
 0x223   : > { %2194 = vmatpush3.bf16.msra.mxu1 %v2438_v31 }
 0x224   : > { %2195 = vmatprep.subr.bf16.mxu1 %v2492_v8 }
 0x227   : > { %2196 = vmatpush3.bf16.msra.mxu1 %v2439_v32 }
 0x228   : > { %2197 = vmatprep.subr.bf16.mxu1 %v2492_v8 }
 0x22b   : > { %2198 = vmatpush3.bf16.msra.mxu1 %v2440_v33 }
 0x22c   : > { %2199 = vmatprep.subr.bf16.mxu1 %v2492_v8 }
 0x22f   : > { %2200 = vmatpush3.bf16.msra.mxu1 %v2441_v34 }
 0x230   : > { %2201 = vmatprep.subr.bf16.mxu1 %v2492_v8 }
 0x233   : > { %2202 = vmatpush3.bf16.msra.mxu1 %v2442_v35 }
 0x2e9   : > { %v1638_v38 = vpop.f32.mrb[12].mxu1  ;;  %v1679_v40 = vpop.f32.mrb[16].mxu0 }
 0x2ea   : > { %v1639_v45 = vadd.f32 %v1638_v38, %v1396_v21  ;;  %v1680_v49 = vadd.f32 %v1679_v40, %v1437_v25  ;;  %v1640_v50 = vpop.f32.mrb[13].mxu1  ;;  %v1681_v51 = vpop.f32.mrb[17].mxu0  ;;  %v1880_v40 = vld [vmem:[#allocation2] sm:$0xff] (!%p2145_p6) }
 0x2eb   : > { %v1641_v52 = vadd.f32 %v1640_v50, %v1398_v22  ;;  %v1682_v54 = vadd.f32 %v1681_v51, %v1439_v26  ;;  %v1642_v55 = vpop.f32.mrb[14].mxu1  ;;  %v1683_v56 = vpop.f32.mrb[18].mxu0  ;;  %1882 = vst [vmem:[%s3131_s11] sm:$0xff] (!%p2145_p6), %v1880_v40 }
 0x2ec   : > { %v1708_v57 = vadd.f32 %v1691_v37, %v1639_v45  ;;  %v1643_v58 = vpop.f32.mrb[15].mxu1  ;;  %v1684_v59 = vpop.f32.mrb[19].mxu0  ;;  %v1710_v5 = vadd.f32 %v1699_v48, %v1680_v49 }
 0x2ed   : > { %v1709_v61 = vadd.f32 %v1695_v53, %v1641_v52  ;;  %v1711_v46 = vadd.f32 %v1703_v1, %v1682_v54 }
 0x2ee   : > { %v2133_v60 = vmul.f32 -1.442695, %v1708_v57 }
 0x2ef   : > { %v2134_v44 = vmul.f32 -1.442695, %v1709_v61 }
 0x2f0   : > { %2453 = vpow2.f32 %v2133_v60 }
 0x2f1   : > { %2455 = vpow2.f32 %v2134_v44 }
 0x2fa   : > { %v2454_v62 = vpop.eup %2453 }
 0x2fb   : > { %v1715_v63 = vadd.f32 1.0, %v2454_v62  ;;  %v2456_v0 = vpop.eup %2455 }
 0x2fc   : > { %v1721_v41 = vadd.f32 1.0, %v2456_v0 }
 0x2fd   : > { %2457 = vrcp.f32 %v1715_v63 }
 0x2fe   : > { %2459 = vrcp.f32 %v1721_v41 }
 0x307   : > { %v2458_v2 = vpop.eup %2457 }
 0x308   : > { %v1724_v47 = vmul.f32 %v2458_v2, %v1711_v46  ;;  %v2460_v7 = vpop.eup %2459 }
 0x309   : > { %v1727_v9 = vsub.f32 1.0, %v2460_v7  ;;  %v1729_v13 = vmul.f32 %v2460_v7, %v2929_v4 }
 0x30a   : > { %v1725_v6 = vadd.f32 %v1724_v47, %v1710_v5 }
 0x30c   : > { %2461 = vtanh.f32 %v1725_v6 }
 0x316   : > { %v2462_v11 = vpop.eup %2461 }
 0x317   : > { %v1728_v12 = vmul.f32 %v2462_v11, %v1727_v9 }
 0x319   : > { %v1730_v14 = vadd.f32 %v1729_v13, %v1728_v12 }
 0x31b   : > { %1731 = vst [vmem:[#allocation2 + $0x8] sm:$0xff] %v1730_v14  ;;  %v1732_v42 = vpack.c.bf16 %v1730_v14, %v1730_v14 }
 0x31d   : > { %2204 = vmatmul.mubr.bf16.vlgmr.msra.gmra.mrb[16].mxu1 %v1732_v42 }
 0x322   : > { %v1881_v45 = vld [vmem:[#allocation2 + $0x8] sm:$0xff] (!%p2145_p6) }
 0x323   : > { %1883 = vst [vmem:[%s3131_s11 + $0x8] sm:$0xff] (!%p2145_p6), %v1881_v45 }
 0x3f0   : > { %v1838_v3 = vpop.f32.mrb[16].mxu1 }
 0x3f1   : > { %v1839_v15 = vadd.f32 %v2135_v43, %v1838_v3  ;;  %v2205_v16 = vpop.f32.mrb[17].mxu1 }
 0x3f2   : > { %v1841_v10 = vpop.f32.mrb[18].mxu1 }
 0x3f3   : > { %1844 = vmax.xlane.f32.xlu0 %v1839_v15  ;;  %v2206_v17 = vpop.f32.mrb[19].mxu1 }
 0x480   : > { %v1845_v19 = vpop.xlane.xlu0 %1844 }
 0x481   : > { %v1846_v20 = vsub.f32 %v1839_v15, %v1845_v19  ;;  %vm1855_vm2 = vcmp.eq.f32.partialorder %v1839_v15, %v1845_v19 }
 0x482   : > { %v1856_v21 = vsel %vm1855_vm2, %v431_v18, 128 }
 0x483   : > { %v1858_v4 = vshra.s32 %v1856_v21, 16  ;;  %v1847_v22 = vmul.f32 1.442695, %v1846_v20  ;;  %v1857_v25 = vand.u32 65535, %v1856_v21 }
 0x485   : > { %v1860_v23 = vcvt.s32.f32 %v1858_v4  ;;  %2463 = vpow2.f32 %v1847_v22  ;;  %v1859_v27 = vcvt.s32.f32 %v1857_v25 }
 0x487   : > { %1861 = vmin.xlane.f32.xlu0 %v1860_v23 }
 0x48f   : > { %v2464_v24 = vpop.eup %2463 }
 0x490   : > { %1849 = vadd.xlane.f32.xlu1 %v2464_v24 }
 0x514   : > { %v1862_v26 = vpop.xlane.xlu0 %1861 }
 0x515   : > { %vm1863_vm3 = vcmp.eq.f32.partialorder %v1860_v23, %v1862_v26  ;;  %v1868_v32 = vcvt.f32.s32 %v1862_v26 }
 0x516   : > { %v1864_v28 = vsel %vm1863_vm3, %v1859_v27, inf }
 0x517   : > { %1865 = vmin.xlane.f32.xlu1 %v1864_v28  ;;  %v1869_v34 = vshll.u32 %v1868_v32, 16 }
 0x51d   : > { %v1850_v39 = vpop.xlane.xlu1 %1849 }
 0x51e   : > { %2465 = vlog2.f32 %v1850_v39 }
 0x528   : > { %v2466_v29 = vpop.eup %2465 }
 0x529   : > { %v1852_v30 = vmul.f32 0.6931472, %v2466_v29 }
 0x52b   : > { %v1853_v31 = vsub.f32 %v1846_v20, %v1852_v30 }
 0x52d   : > { %1854 = vst [vmem:[%s2580_s25] sm:$0xff] %v1853_v31 }
 0x5a4   : > { %v1866_v33 = vpop.xlane.xlu1 %1865 }
 0x5a5   : > { %v1867_v35 = vcvt.f32.s32 %v1866_v33 }
 0x5a7   : > { %v1870_v36 = vadd.s32 %v1869_v34, %v1867_v35  ;;  %1879 = sbr.rel (%p2145_p6) target bundleno = 1454 (0x5ae), region = 68 }
 0x5a9   : > { %vm1871_vm4 = vcmp.eq.s32.totalorder %v431_v18, %v1870_v36 }
 0x5aa   : > { %v2144_v37 = vsel %vm1871_vm4, 1.0, %v2492_v8 }
 0x5ab   : > { %v1874_v38 = vpack.c.bf16 %v2144_v37, %v2144_v37 }
 0x5ad   : > { %1875 = vst [vmem:[#allocation3] sm:$0xf] %v1874_v38 }
 0x5ae PF: > { %s22_s19 = sadd.s32 1, %s2489_s19   ;;  %s3132_s17 = smov %s2485_s18 }
 0x5af   : > { %p19_p7 = scmp.ge.s32.totalorder %s22_s19, 10   ;;  %s3133_s18 = smov %s3135_s20 }
 0x5b1   :  { %21 = sbr.rel (!%p19_p7) target bundleno = 2 (0x2), region = 111 }

</bundles_post_ra>
